<compile_context>
chip_gen: v5e
topology: v5e:2x2
jax: 0.10.0
libtpu: 0.0.40
codegen_flags: <defaults>
</compile_context>

<pallas_src>
import functools
import math

import numpy as np
import jax
import jax.numpy as jnp
from jax.experimental import pallas as pl
from jax.experimental.pallas import tpu as pltpu

_LANES_CANDIDATES = (2048, 1024, 512, 256, 128)
_TARGET_BLOCK_BYTES = 4 << 20   # ~4 MiB blocks: amortize per-step overhead, good for v7x HBM
_MIN_BLOCK_BYTES = 512 << 10    # never shrink below this when chasing a larger grid
_MIN_GRID = 8                   # >= 4 pipeline steps per TC on 2-TC chips (v7x)
_SMALL_BYTES = 256 << 10        # below this, fused jnp.clip beats kernel launch overhead
_VMEM_LIMIT_BYTES = 32 << 20    # covers 2 arrays x 2 buffers x 4 MiB with headroom; ok on v5e..v7x


def _cdiv(a, b):
    return -(-a // b)


def _clamp_static_kernel(x_ref, o_ref, *, lo, hi):
    # torch.clamp(x, min, max) == min(max(x, min), max)  (min applied first)
    o_ref[...] = jnp.minimum(jnp.maximum(x_ref[...], lo), hi)


def _clamp_dynamic_kernel(b_ref, x_ref, o_ref):
    # b_ref is a (2,) SMEM array holding [min_value, max_value].
    lo = b_ref[0].astype(x_ref.dtype)
    hi = b_ref[1].astype(x_ref.dtype)
    o_ref[...] = jnp.minimum(jnp.maximum(x_ref[...], lo), hi)


def _static_bounds(min_value, max_value, dtype):
    """Return (lo, hi) as Python scalars matched to `dtype`, or None if the
    bounds are traced JAX values (cannot be concretized)."""
    try:
        if jnp.issubdtype(dtype, jnp.integer):
            info = jnp.iinfo(dtype)
            # clamp-to-min means max(x, min): for float bounds the effective
            # integer bound is ceil(min) / floor(max); clip into dtype range
            # so out-of-range bounds don't wrap.
            lo = int(np.clip(math.ceil(float(min_value)), info.min, info.max))
            hi = int(np.clip(math.floor(float(max_value)), info.min, info.max))
        else:
            lo = float(min_value)
            hi = float(max_value)
        return lo, hi
    except (TypeError, ValueError, jax.errors.JAXTypeError):
        return None  # traced bounds -> dynamic (SMEM) path


def _choose_lanes(padded_total):
    for cand in _LANES_CANDIDATES:
        if padded_total % cand == 0:
            return cand
    return 128  # unreachable: padded_total is a multiple of 128


def _choose_tile_rows(rows, row_bytes, sub):
    """Pick a row-tile (multiple of `sub`) targeting ~4 MiB blocks; for large
    tensors prefer >= _MIN_GRID blocks (pipeline overlap / v7x's 2 TCs) while
    keeping each block >= _MIN_BLOCK_BYTES."""
    max_tr = max(sub, (_TARGET_BLOCK_BYTES // row_bytes) // sub * sub)
    if rows <= max_tr:
        return rows  # single full-extent block (best for single-TC chips)
    min_tr = max(sub, (_MIN_BLOCK_BYTES // row_bytes) // sub * sub)
    tr = max_tr
    if _cdiv(rows, tr) < _MIN_GRID:
        want = _cdiv(_cdiv(rows, _MIN_GRID), sub) * sub
        tr = max(min_tr, min(max_tr, want))
    return tr


def constrain_pallas(x, min_value, max_value):
    """Elementwise clamp of `x` between min_value and max_value (Pallas TPU)."""
    orig_shape = x.shape
    dtype = x.dtype
    total = x.size
    if total == 0:
        return x

    itemsize = jnp.dtype(dtype).itemsize
    bounds = _static_bounds(min_value, max_value, dtype)

    # Tiny inputs: XLA-fused clip beats pallas_call + pipeline prologue cost.
    if total * itemsize <= _SMALL_BYTES:
        if bounds is not None:
            lo, hi = bounds
            return jnp.clip(x, lo, hi).astype(dtype)
        lo = jnp.asarray(min_value).astype(dtype)
        hi = jnp.asarray(max_value).astype(dtype)
        return jnp.clip(x, lo, hi)

    x_flat = x.reshape(-1)

    # Lane-dense 2D view.  Pad only when total isn't a multiple of 128 (lane
    # quantum); row-count misalignment is handled for free by a cdiv grid with
    # a masked boundary block (garbage rows are clamped then discarded by the
    # masked store — safe for an elementwise op).
    padded_total = _cdiv(total, 128) * 128
    needs_pad = padded_total != total
    if needs_pad:
        x_flat = jnp.pad(x_flat, (0, padded_total - total))

    lanes = _choose_lanes(padded_total)
    rows = padded_total // lanes
    sub = max(8, 32 // itemsize)  # sublane packing quantum for this dtype
    tile_rows = _choose_tile_rows(rows, lanes * itemsize, sub)
    grid = (_cdiv(rows, tile_rows),)

    x2d = x_flat.reshape(rows, lanes)
    data_spec = pl.BlockSpec((tile_rows, lanes), lambda i: (i, 0))

    if bounds is not None:
        lo, hi = bounds
        kernel = functools.partial(_clamp_static_kernel, lo=lo, hi=hi)
        in_specs = [data_spec]
        operands = (x2d,)
    else:
        # Traced bounds: ship them through SMEM (32-bit scalars).
        smem_dtype = jnp.int32 if jnp.issubdtype(dtype, jnp.integer) else jnp.float32
        b = jnp.stack([jnp.asarray(min_value), jnp.asarray(max_value)]).astype(smem_dtype)
        kernel = _clamp_dynamic_kernel
        in_specs = [pl.BlockSpec(memory_space=pltpu.MemorySpace.SMEM), data_spec]
        operands = (b, x2d)

    out2d = pl.pallas_call(
        kernel,
        out_shape=jax.ShapeDtypeStruct((rows, lanes), dtype),
        grid_spec=pltpu.PrefetchScalarGridSpec(
            num_scalar_prefetch=0,
            grid=grid,
            in_specs=in_specs,
            out_specs=pl.BlockSpec((tile_rows, lanes), lambda i: (i, 0)),
        ),
        compiler_params=pltpu.CompilerParams(
            dimension_semantics=("parallel",),
            vmem_limit_bytes=_VMEM_LIMIT_BYTES,
        ),
    )(*operands)

    out_flat = out2d.reshape(-1)
    if needs_pad:
        out_flat = out_flat[:total]
    return out_flat.reshape(orig_shape)


if __name__ == "__main__":
    key = jax.random.PRNGKey(0)
    k1, k2, k3, k4, k5 = jax.random.split(key, 5)
    min_value, max_value = -1.0, 1.0

    checks = []

    # (1) Module-spec-sized input (2, 4, 16, 16): small-tensor fast path.
    x_small = jax.random.normal(k1, (2, 4, 16, 16), dtype=jnp.float32) * 3.0
    checks.append((x_small, constrain_pallas(x_small, min_value, max_value),
                   min_value, max_value))

    # (2) Aligned medium tensor -> single full-extent Pallas block.
    x_med = jax.random.normal(k2, (2, 8, 128, 128), dtype=jnp.float32) * 3.0
    checks.append((x_med, constrain_pallas(x_med, min_value, max_value),
                   min_value, max_value))

    # (3) Element count not a multiple of 128 -> minimal pad-to-128 tail path.
    x_odd = jax.random.normal(k3, (3, 5, 37, 129), dtype=jnp.float32) * 3.0
    checks.append((x_odd, constrain_pallas(x_odd, min_value, max_value),
                   min_value, max_value))

    # (4) bfloat16 with rows not a multiple of the sublane quantum.
    x_bf16 = (jax.random.normal(k4, (4, 3, 100, 256), dtype=jnp.float32) * 3.0
              ).astype(jnp.bfloat16)
    checks.append((x_bf16, constrain_pallas(x_bf16, min_value, max_value),
                   min_value, max_value))

    # (5) Multi-block cdiv grid with a masked boundary block + traced bounds
    #     under jit (exercises the SMEM dynamic-bounds path).
    x_big = jax.random.normal(k5, (8, 16, 128, 130), dtype=jnp.float32) * 3.0
    lo_t = jnp.float32(-0.7)
    hi_t = jnp.float32(0.9)
    out_big = jax.jit(constrain_pallas)(x_big, lo_t, hi_t)
    checks.append((x_big, out_big, lo_t, hi_t))

    for x, out, lo, hi in checks:
        out = jax.block_until_ready(out)
        ref = jnp.clip(x, lo, hi)
        assert out.shape == x.shape, "shape mismatch"
        assert out.dtype == x.dtype, "dtype mismatch"
        assert bool(jnp.all(out == ref)), "mismatch vs reference clamp"

    print("KERNEL_OK")
</pallas_src>

<mosaic_0001>
module attributes {stable_mosaic.version = 11 : i64} {
  func.func @_clamp_static_kernel(%arg0: i32, %arg1: memref<128x2048xf32, #tpu.memory_space<vmem>>, %arg2: memref<128x2048xf32, #tpu.memory_space<vmem>>) attributes {dimension_semantics = [#tpu.dimension_semantics<parallel>], iteration_bounds = array<i64: 1>, scalar_prefetch = 0 : i64, scratch_operands = 0 : i64, tpu.core_type = #tpu.core_type<tc>, window_params = [{transform_indices = @transform_0, window_bounds = array<i64: 128, 2048>}, {transform_indices = @transform_1, window_bounds = array<i64: 128, 2048>}]} {
    %c0 = arith.constant 0 : index
    %c0_0 = arith.constant 0 : index
    %0 = vector.load %arg1[%c0, %c0_0] : memref<128x2048xf32, #tpu.memory_space<vmem>>, vector<128x2048xf32>
    %cst = arith.constant -1.000000e+00 : f32
    %1 = vector.broadcast %cst : f32 to vector<128x2048xf32>
    %2 = arith.maximumf %0, %1 : vector<128x2048xf32>
    %cst_1 = arith.constant 1.000000e+00 : f32
    %3 = vector.broadcast %cst_1 : f32 to vector<128x2048xf32>
    %4 = arith.minimumf %2, %3 : vector<128x2048xf32>
    %c0_2 = arith.constant 0 : index
    %c0_3 = arith.constant 0 : index
    %5 = vector.load %arg2[%c0_2, %c0_3] : memref<128x2048xf32, #tpu.memory_space<vmem>>, vector<128x2048xf32>
    tpu.vector_store %arg2[%c0_2, %c0_3], %4 {strides = array<i32>} : memref<128x2048xf32, #tpu.memory_space<vmem>>, vector<128x2048xf32>,
    return
  }
  func.func @transform_0(%arg0: i32) -> (i32, i32) {
    %c0_i32 = arith.constant 0 : i32
    %c0_i32_0 = arith.constant 0 : i32
    return %arg0, %c0_i32 : i32, i32
  }
  func.func @transform_1(%arg0: i32) -> (i32, i32) {
    %c0_i32 = arith.constant 0 : i32
    %c0_i32_0 = arith.constant 0 : i32
    return %arg0, %c0_i32 : i32, i32
  }
}

</mosaic_0001>

<bundles_post_ra>
// kernel: tpu_custom_call.1
= control target key start
LH: loop header
LB: loop body
LE: loop exit
PB: predicated region body
PF: predicated region fallthrough
CT: control target
= control target key end

     0   :  { %6 = vsyncpa [#allocation3], 0  ;;  %s1406_s0 = inlined_call_operand.hbm [shape: f32[128,2048], index: 0, kind: input, shape index: {}]   ;;  %s1407_s1 = inlined_call_operand.hbm [shape: f32[128,2048], index: 1, kind: output, shape index: {}]  }
   0x1   :  { %7 = vsyncpa [#allocation4], 0  ;;  %s12_s8 = sshll.u32 %s1406_s0, 4  ;;  %s1380_s9 = smov [#allocation2]   ;;  %s13_s8 = int_to_ptr.hbm [resolvable:$true] %s12_s8 }
   0x2   :  { %s14_s10 = sshll.u32 %s1380_s9, 4  ;;  %s1381_s11 = smov 2048   ;;  %s15_s10 = int_to_ptr.vmem [resolvable:$true] %s14_s10 }
   0x3   :  { %s1382_s12 = smov 128  }
   0x4   :  { %20 = dma.hbm_to_vmem [thread:$0]  %s13_s8, 32768, %s15_s10, [#allocation3], %s1381_s11, %s1381_s11, %s1382_s12  }
   0x5   :  { %1376 = dma.done.wait [#allocation3], 32768  }
   0x6   :  { %1377 = vsyncadd [#allocation3], 4294934528  ;;  %v25_v0 = vld [vmem:[#allocation2] sm:$0xff]  ;;  %v26_v1 = vld [vmem:[#allocation2 + $0x8] sm:$0xff]  ;;  %s1383_s0 = smov [#allocation5]   ;;  %s1055_s16 = sshll.u32 %s1407_s1, 4  ;;  %s1056_s16 = int_to_ptr.hbm [resolvable:$true] %s1055_s16 }
   0x7   :  { %v27_v2 = vld [vmem:[#allocation2 + $0x10] sm:$0xff]  ;;  %v1068_v3 = vclamps-f32 %v25_v0, 1.0  ;;  %v1069_v4 = vclamps-f32 %v26_v1, 1.0  ;;  %v28_v6 = vld [vmem:[#allocation2 + $0x18] sm:$0xff]  ;;  %v29_v7 = vld [vmem:[#allocation2 + $0x20] sm:$0xff]  ;;  %s1053_s13 = sshll.u32 %s1383_s0, 4  ;;  %s1054_s13 = int_to_ptr.vmem [resolvable:$true] %s1053_s13 }
   0x8   :  { %v1070_v5 = vclamps-f32 %v27_v2, 1.0  ;;  %v30_v8 = vld [vmem:[#allocation2 + $0x28] sm:$0xff]  ;;  %v1071_v9 = vclamps-f32 %v28_v6, 1.0  ;;  %v31_v10 = vld [vmem:[#allocation2 + $0x30] sm:$0xff]  ;;  %v1072_v11 = vclamps-f32 %v29_v7, 1.0  ;;  %v32_v12 = vld [vmem:[#allocation2 + $0x38] sm:$0xff] }
   0x9   :  { %793 = vst [vmem:[#allocation5] sm:$0xff] %v1068_v3  ;;  %v1073_v13 = vclamps-f32 %v30_v8, 1.0  ;;  %v33_v14 = vld [vmem:[#allocation2 + $0x40] sm:$0xff]  ;;  %v1074_v15 = vclamps-f32 %v31_v10, 1.0  ;;  %v34_v16 = vld [vmem:[#allocation2 + $0x48] sm:$0xff]  ;;  %v1075_v17 = vclamps-f32 %v32_v12, 1.0 }
   0xa   :  { %794 = vst [vmem:[#allocation5 + $0x8] sm:$0xff] %v1069_v4  ;;  %v35_v18 = vld [vmem:[#allocation2 + $0x50] sm:$0xff]  ;;  %v1076_v19 = vclamps-f32 %v33_v14, 1.0  ;;  %v36_v20 = vld [vmem:[#allocation2 + $0x58] sm:$0xff]  ;;  %v1077_v21 = vclamps-f32 %v34_v16, 1.0  ;;  %v37_v22 = vld [vmem:[#allocation2 + $0x60] sm:$0xff] }
   0xb   :  { %795 = vst [vmem:[#allocation5 + $0x10] sm:$0xff] %v1070_v5  ;;  %v1078_v23 = vclamps-f32 %v35_v18, 1.0  ;;  %v38_v24 = vld [vmem:[#allocation2 + $0x68] sm:$0xff]  ;;  %v1079_v25 = vclamps-f32 %v36_v20, 1.0  ;;  %v39_v26 = vld [vmem:[#allocation2 + $0x70] sm:$0xff]  ;;  %v1080_v27 = vclamps-f32 %v37_v22, 1.0 }
   0xc   :  { %796 = vst [vmem:[#allocation5 + $0x18] sm:$0xff] %v1071_v9  ;;  %v40_v28 = vld [vmem:[#allocation2 + $0x78] sm:$0xff]  ;;  %v1081_v29 = vclamps-f32 %v38_v24, 1.0  ;;  %v41_v30 = vld [vmem:[#allocation2 + $0x80] sm:$0xff]  ;;  %v1082_v31 = vclamps-f32 %v39_v26, 1.0  ;;  %v42_v32 = vld [vmem:[#allocation2 + $0x88] sm:$0xff] }
   0xd   :  { %797 = vst [vmem:[#allocation5 + $0x20] sm:$0xff] %v1072_v11  ;;  %v1083_v33 = vclamps-f32 %v40_v28, 1.0  ;;  %v43_v34 = vld [vmem:[#allocation2 + $0x90] sm:$0xff]  ;;  %v1084_v35 = vclamps-f32 %v41_v30, 1.0  ;;  %v44_v36 = vld [vmem:[#allocation2 + $0x98] sm:$0xff]  ;;  %v1085_v37 = vclamps-f32 %v42_v32, 1.0 }
   0xe   :  { %798 = vst [vmem:[#allocation5 + $0x28] sm:$0xff] %v1073_v13  ;;  %v45_v38 = vld [vmem:[#allocation2 + $0xa0] sm:$0xff]  ;;  %v1086_v39 = vclamps-f32 %v43_v34, 1.0  ;;  %v46_v40 = vld [vmem:[#allocation2 + $0xa8] sm:$0xff]  ;;  %v1087_v41 = vclamps-f32 %v44_v36, 1.0  ;;  %v47_v42 = vld [vmem:[#allocation2 + $0xb0] sm:$0xff] }
   0xf   :  { %799 = vst [vmem:[#allocation5 + $0x30] sm:$0xff] %v1074_v15  ;;  %v1088_v43 = vclamps-f32 %v45_v38, 1.0  ;;  %v48_v44 = vld [vmem:[#allocation2 + $0xb8] sm:$0xff]  ;;  %v1089_v45 = vclamps-f32 %v46_v40, 1.0  ;;  %v49_v46 = vld [vmem:[#allocation2 + $0xc0] sm:$0xff]  ;;  %v1090_v47 = vclamps-f32 %v47_v42, 1.0 }
  0x10   :  { %800 = vst [vmem:[#allocation5 + $0x38] sm:$0xff] %v1075_v17  ;;  %v50_v48 = vld [vmem:[#allocation2 + $0xc8] sm:$0xff]  ;;  %v1091_v49 = vclamps-f32 %v48_v44, 1.0  ;;  %v51_v50 = vld [vmem:[#allocation2 + $0xd0] sm:$0xff]  ;;  %v1092_v51 = vclamps-f32 %v49_v46, 1.0  ;;  %v52_v52 = vld [vmem:[#allocation2 + $0xd8] sm:$0xff] }
  0x11   :  { %801 = vst [vmem:[#allocation5 + $0x40] sm:$0xff] %v1076_v19  ;;  %v1093_v53 = vclamps-f32 %v50_v48, 1.0  ;;  %v53_v54 = vld [vmem:[#allocation2 + $0xe0] sm:$0xff]  ;;  %v1094_v55 = vclamps-f32 %v51_v50, 1.0  ;;  %v54_v56 = vld [vmem:[#allocation2 + $0xe8] sm:$0xff]  ;;  %v1095_v57 = vclamps-f32 %v52_v52, 1.0 }
  0x12   :  { %802 = vst [vmem:[#allocation5 + $0x48] sm:$0xff] %v1077_v21  ;;  %v55_v58 = vld [vmem:[#allocation2 + $0xf0] sm:$0xff]  ;;  %v1096_v59 = vclamps-f32 %v53_v54, 1.0  ;;  %v56_v60 = vld [vmem:[#allocation2 + $0xf8] sm:$0xff]  ;;  %v1097_v61 = vclamps-f32 %v54_v56, 1.0  ;;  %v57_v62 = vld [vmem:[#allocation2 + $0x100] sm:$0xff] }
  0x13   :  { %803 = vst [vmem:[#allocation5 + $0x50] sm:$0xff] %v1078_v23  ;;  %v1098_v63 = vclamps-f32 %v55_v58, 1.0  ;;  %v58_v0 = vld [vmem:[#allocation2 + $0x108] sm:$0xff]  ;;  %v1099_v1 = vclamps-f32 %v56_v60, 1.0  ;;  %v59_v2 = vld [vmem:[#allocation2 + $0x110] sm:$0xff]  ;;  %v1100_v3 = vclamps-f32 %v57_v62, 1.0 }
  0x14   :  { %804 = vst [vmem:[#allocation5 + $0x58] sm:$0xff] %v1079_v25  ;;  %v60_v4 = vld [vmem:[#allocation2 + $0x118] sm:$0xff]  ;;  %v1101_v5 = vclamps-f32 %v58_v0, 1.0  ;;  %v61_v6 = vld [vmem:[#allocation2 + $0x120] sm:$0xff]  ;;  %v1102_v7 = vclamps-f32 %v59_v2, 1.0  ;;  %v62_v8 = vld [vmem:[#allocation2 + $0x128] sm:$0xff] }
  0x15   :  { %805 = vst [vmem:[#allocation5 + $0x60] sm:$0xff] %v1080_v27  ;;  %v1103_v9 = vclamps-f32 %v60_v4, 1.0  ;;  %v63_v10 = vld [vmem:[#allocation2 + $0x130] sm:$0xff]  ;;  %v1104_v11 = vclamps-f32 %v61_v6, 1.0  ;;  %v64_v12 = vld [vmem:[#allocation2 + $0x138] sm:$0xff]  ;;  %v1105_v13 = vclamps-f32 %v62_v8, 1.0 }
  0x16   :  { %806 = vst [vmem:[#allocation5 + $0x68] sm:$0xff] %v1081_v29  ;;  %v65_v14 = vld [vmem:[#allocation2 + $0x140] sm:$0xff]  ;;  %v1106_v15 = vclamps-f32 %v63_v10, 1.0  ;;  %v66_v16 = vld [vmem:[#allocation2 + $0x148] sm:$0xff]  ;;  %v1107_v17 = vclamps-f32 %v64_v12, 1.0  ;;  %v67_v18 = vld [vmem:[#allocation2 + $0x150] sm:$0xff] }
  0x17   :  { %807 = vst [vmem:[#allocation5 + $0x70] sm:$0xff] %v1082_v31  ;;  %v1108_v19 = vclamps-f32 %v65_v14, 1.0  ;;  %v68_v20 = vld [vmem:[#allocation2 + $0x158] sm:$0xff]  ;;  %v1109_v21 = vclamps-f32 %v66_v16, 1.0  ;;  %v69_v22 = vld [vmem:[#allocation2 + $0x160] sm:$0xff]  ;;  %v1110_v23 = vclamps-f32 %v67_v18, 1.0 }
  0x18   :  { %808 = vst [vmem:[#allocation5 + $0x78] sm:$0xff] %v1083_v33  ;;  %v70_v24 = vld [vmem:[#allocation2 + $0x168] sm:$0xff]  ;;  %v1111_v25 = vclamps-f32 %v68_v20, 1.0  ;;  %v71_v26 = vld [vmem:[#allocation2 + $0x170] sm:$0xff]  ;;  %v1112_v27 = vclamps-f32 %v69_v22, 1.0  ;;  %v72_v28 = vld [vmem:[#allocation2 + $0x178] sm:$0xff] }
  0x19   :  { %809 = vst [vmem:[#allocation5 + $0x80] sm:$0xff] %v1084_v35  ;;  %v1113_v29 = vclamps-f32 %v70_v24, 1.0  ;;  %v73_v30 = vld [vmem:[#allocation2 + $0x180] sm:$0xff]  ;;  %v1114_v31 = vclamps-f32 %v71_v26, 1.0  ;;  %v74_v32 = vld [vmem:[#allocation2 + $0x188] sm:$0xff]  ;;  %v1115_v33 = vclamps-f32 %v72_v28, 1.0 }
  0x1a   :  { %810 = vst [vmem:[#allocation5 + $0x88] sm:$0xff] %v1085_v37  ;;  %v75_v34 = vld [vmem:[#allocation2 + $0x190] sm:$0xff]  ;;  %v1116_v35 = vclamps-f32 %v73_v30, 1.0  ;;  %v76_v36 = vld [vmem:[#allocation2 + $0x198] sm:$0xff]  ;;  %v1117_v37 = vclamps-f32 %v74_v32, 1.0  ;;  %v77_v38 = vld [vmem:[#allocation2 + $0x1a0] sm:$0xff] }
  0x1b   :  { %811 = vst [vmem:[#allocation5 + $0x90] sm:$0xff] %v1086_v39  ;;  %v1118_v39 = vclamps-f32 %v75_v34, 1.0  ;;  %v78_v40 = vld [vmem:[#allocation2 + $0x1a8] sm:$0xff]  ;;  %v79_v42 = vld [vmem:[#allocation2 + $0x1b0] sm:$0xff]  ;;  %v80_v44 = vld [vmem:[#allocation2 + $0x1b8] sm:$0xff] }
  0x1c   :  { %812 = vst [vmem:[#allocation5 + $0x98] sm:$0xff] %v1087_v41  ;;  %v1119_v41 = vclamps-f32 %v76_v36, 1.0  ;;  %v81_v46 = vld [vmem:[#allocation2 + $0x1c0] sm:$0xff]  ;;  %v82_v48 = vld [vmem:[#allocation2 + $0x1c8] sm:$0xff]  ;;  %v83_v50 = vld [vmem:[#allocation2 + $0x1d0] sm:$0xff] }
  0x1d   :  { %813 = vst [vmem:[#allocation5 + $0xa0] sm:$0xff] %v1088_v43  ;;  %v1120_v43 = vclamps-f32 %v77_v38, 1.0  ;;  %v84_v52 = vld [vmem:[#allocation2 + $0x1d8] sm:$0xff]  ;;  %v85_v54 = vld [vmem:[#allocation2 + $0x1e0] sm:$0xff]  ;;  %v86_v56 = vld [vmem:[#allocation2 + $0x1e8] sm:$0xff] }
  0x1e   :  { %814 = vst [vmem:[#allocation5 + $0xa8] sm:$0xff] %v1089_v45  ;;  %v1121_v45 = vclamps-f32 %v78_v40, 1.0  ;;  %v87_v58 = vld [vmem:[#allocation2 + $0x1f0] sm:$0xff]  ;;  %v88_v60 = vld [vmem:[#allocation2 + $0x1f8] sm:$0xff]  ;;  %v89_v62 = vld [vmem:[#allocation2 + $0x200] sm:$0xff] }
  0x1f   :  { %815 = vst [vmem:[#allocation5 + $0xb0] sm:$0xff] %v1090_v47  ;;  %v1122_v47 = vclamps-f32 %v79_v42, 1.0  ;;  %v90_v0 = vld [vmem:[#allocation2 + $0x208] sm:$0xff]  ;;  %v91_v2 = vld [vmem:[#allocation2 + $0x210] sm:$0xff]  ;;  %v92_v4 = vld [vmem:[#allocation2 + $0x218] sm:$0xff] }
  0x20   :  { %816 = vst [vmem:[#allocation5 + $0xb8] sm:$0xff] %v1091_v49  ;;  %v1123_v49 = vclamps-f32 %v80_v44, 1.0  ;;  %v93_v6 = vld [vmem:[#allocation2 + $0x220] sm:$0xff]  ;;  %v94_v8 = vld [vmem:[#allocation2 + $0x228] sm:$0xff]  ;;  %v95_v10 = vld [vmem:[#allocation2 + $0x230] sm:$0xff] }
  0x21   :  { %817 = vst [vmem:[#allocation5 + $0xc0] sm:$0xff] %v1092_v51  ;;  %v1124_v51 = vclamps-f32 %v81_v46, 1.0  ;;  %v96_v12 = vld [vmem:[#allocation2 + $0x238] sm:$0xff]  ;;  %v97_v14 = vld [vmem:[#allocation2 + $0x240] sm:$0xff]  ;;  %v98_v16 = vld [vmem:[#allocation2 + $0x248] sm:$0xff] }
  0x22   :  { %818 = vst [vmem:[#allocation5 + $0xc8] sm:$0xff] %v1093_v53  ;;  %v1125_v53 = vclamps-f32 %v82_v48, 1.0  ;;  %v99_v18 = vld [vmem:[#allocation2 + $0x250] sm:$0xff]  ;;  %v100_v20 = vld [vmem:[#allocation2 + $0x258] sm:$0xff]  ;;  %v101_v22 = vld [vmem:[#allocation2 + $0x260] sm:$0xff] }
  0x23   :  { %819 = vst [vmem:[#allocation5 + $0xd0] sm:$0xff] %v1094_v55  ;;  %v1126_v55 = vclamps-f32 %v83_v50, 1.0  ;;  %v102_v24 = vld [vmem:[#allocation2 + $0x268] sm:$0xff]  ;;  %v103_v26 = vld [vmem:[#allocation2 + $0x270] sm:$0xff]  ;;  %v104_v28 = vld [vmem:[#allocation2 + $0x278] sm:$0xff] }
  0x24   :  { %820 = vst [vmem:[#allocation5 + $0xd8] sm:$0xff] %v1095_v57  ;;  %v1127_v57 = vclamps-f32 %v84_v52, 1.0  ;;  %v105_v30 = vld [vmem:[#allocation2 + $0x280] sm:$0xff]  ;;  %v106_v32 = vld [vmem:[#allocation2 + $0x288] sm:$0xff]  ;;  %v107_v34 = vld [vmem:[#allocation2 + $0x290] sm:$0xff] }
  0x25   :  { %821 = vst [vmem:[#allocation5 + $0xe0] sm:$0xff] %v1096_v59  ;;  %v1128_v59 = vclamps-f32 %v85_v54, 1.0  ;;  %v108_v36 = vld [vmem:[#allocation2 + $0x298] sm:$0xff]  ;;  %v109_v38 = vld [vmem:[#allocation2 + $0x2a0] sm:$0xff]  ;;  %v110_v40 = vld [vmem:[#allocation2 + $0x2a8] sm:$0xff] }
  0x26   :  { %822 = vst [vmem:[#allocation5 + $0xe8] sm:$0xff] %v1097_v61  ;;  %v1129_v61 = vclamps-f32 %v86_v56, 1.0  ;;  %v111_v42 = vld [vmem:[#allocation2 + $0x2b0] sm:$0xff]  ;;  %v112_v44 = vld [vmem:[#allocation2 + $0x2b8] sm:$0xff]  ;;  %v113_v46 = vld [vmem:[#allocation2 + $0x2c0] sm:$0xff] }
  0x27   :  { %823 = vst [vmem:[#allocation5 + $0xf0] sm:$0xff] %v1098_v63  ;;  %v1130_v63 = vclamps-f32 %v87_v58, 1.0  ;;  %v114_v48 = vld [vmem:[#allocation2 + $0x2c8] sm:$0xff]  ;;  %v115_v50 = vld [vmem:[#allocation2 + $0x2d0] sm:$0xff]  ;;  %v116_v52 = vld [vmem:[#allocation2 + $0x2d8] sm:$0xff] }
  0x28   :  { %824 = vst [vmem:[#allocation5 + $0xf8] sm:$0xff] %v1099_v1  ;;  %v1131_v1 = vclamps-f32 %v88_v60, 1.0  ;;  %v117_v54 = vld [vmem:[#allocation2 + $0x2e0] sm:$0xff]  ;;  %v118_v56 = vld [vmem:[#allocation2 + $0x2e8] sm:$0xff]  ;;  %v119_v58 = vld [vmem:[#allocation2 + $0x2f0] sm:$0xff] }
  0x29   :  { %825 = vst [vmem:[#allocation5 + $0x100] sm:$0xff] %v1100_v3  ;;  %v1132_v3 = vclamps-f32 %v89_v62, 1.0  ;;  %v120_v60 = vld [vmem:[#allocation2 + $0x2f8] sm:$0xff]  ;;  %v121_v62 = vld [vmem:[#allocation2 + $0x300] sm:$0xff] }
  0x2a   :  { %826 = vst [vmem:[#allocation5 + $0x108] sm:$0xff] %v1101_v5  ;;  %v1133_v5 = vclamps-f32 %v90_v0, 1.0  ;;  %v122_v0 = vld [vmem:[#allocation2 + $0x308] sm:$0xff] }
  0x2b   :  { %827 = vst [vmem:[#allocation5 + $0x110] sm:$0xff] %v1102_v7  ;;  %v1134_v7 = vclamps-f32 %v91_v2, 1.0  ;;  %v123_v2 = vld [vmem:[#allocation2 + $0x310] sm:$0xff] }
  0x2c   :  { %828 = vst [vmem:[#allocation5 + $0x118] sm:$0xff] %v1103_v9  ;;  %v1135_v9 = vclamps-f32 %v92_v4, 1.0  ;;  %v124_v4 = vld [vmem:[#allocation2 + $0x318] sm:$0xff] }
  0x2d   :  { %829 = vst [vmem:[#allocation5 + $0x120] sm:$0xff] %v1104_v11  ;;  %v1136_v11 = vclamps-f32 %v93_v6, 1.0  ;;  %v125_v6 = vld [vmem:[#allocation2 + $0x320] sm:$0xff] }
  0x2e   :  { %830 = vst [vmem:[#allocation5 + $0x128] sm:$0xff] %v1105_v13  ;;  %v1137_v13 = vclamps-f32 %v94_v8, 1.0  ;;  %v126_v8 = vld [vmem:[#allocation2 + $0x328] sm:$0xff] }
  0x2f   :  { %831 = vst [vmem:[#allocation5 + $0x130] sm:$0xff] %v1106_v15  ;;  %v1138_v15 = vclamps-f32 %v95_v10, 1.0  ;;  %v127_v10 = vld [vmem:[#allocation2 + $0x330] sm:$0xff] }
  0x30   :  { %832 = vst [vmem:[#allocation5 + $0x138] sm:$0xff] %v1107_v17  ;;  %v1139_v17 = vclamps-f32 %v96_v12, 1.0  ;;  %v128_v12 = vld [vmem:[#allocation2 + $0x338] sm:$0xff] }
  0x31   :  { %833 = vst [vmem:[#allocation5 + $0x140] sm:$0xff] %v1108_v19  ;;  %v1140_v19 = vclamps-f32 %v97_v14, 1.0  ;;  %v129_v14 = vld [vmem:[#allocation2 + $0x340] sm:$0xff] }
  0x32   :  { %834 = vst [vmem:[#allocation5 + $0x148] sm:$0xff] %v1109_v21  ;;  %v1141_v21 = vclamps-f32 %v98_v16, 1.0  ;;  %v130_v16 = vld [vmem:[#allocation2 + $0x348] sm:$0xff] }
  0x33   :  { %835 = vst [vmem:[#allocation5 + $0x150] sm:$0xff] %v1110_v23  ;;  %v1142_v23 = vclamps-f32 %v99_v18, 1.0  ;;  %v131_v18 = vld [vmem:[#allocation2 + $0x350] sm:$0xff] }
  0x34   :  { %836 = vst [vmem:[#allocation5 + $0x158] sm:$0xff] %v1111_v25  ;;  %v1143_v25 = vclamps-f32 %v100_v20, 1.0  ;;  %v132_v20 = vld [vmem:[#allocation2 + $0x358] sm:$0xff] }
  0x35   :  { %837 = vst [vmem:[#allocation5 + $0x160] sm:$0xff] %v1112_v27  ;;  %v1144_v27 = vclamps-f32 %v101_v22, 1.0  ;;  %v133_v22 = vld [vmem:[#allocation2 + $0x360] sm:$0xff] }
  0x36   :  { %838 = vst [vmem:[#allocation5 + $0x168] sm:$0xff] %v1113_v29  ;;  %v1145_v29 = vclamps-f32 %v102_v24, 1.0  ;;  %v134_v24 = vld [vmem:[#allocation2 + $0x368] sm:$0xff] }
  0x37   :  { %839 = vst [vmem:[#allocation5 + $0x170] sm:$0xff] %v1114_v31  ;;  %v1146_v31 = vclamps-f32 %v103_v26, 1.0  ;;  %v135_v26 = vld [vmem:[#allocation2 + $0x370] sm:$0xff] }
  0x38   :  { %840 = vst [vmem:[#allocation5 + $0x178] sm:$0xff] %v1115_v33  ;;  %v1147_v33 = vclamps-f32 %v104_v28, 1.0  ;;  %v136_v28 = vld [vmem:[#allocation2 + $0x378] sm:$0xff] }
  0x39   :  { %841 = vst [vmem:[#allocation5 + $0x180] sm:$0xff] %v1116_v35  ;;  %v1148_v35 = vclamps-f32 %v105_v30, 1.0  ;;  %v137_v30 = vld [vmem:[#allocation2 + $0x380] sm:$0xff] }
  0x3a   :  { %842 = vst [vmem:[#allocation5 + $0x188] sm:$0xff] %v1117_v37  ;;  %v1149_v37 = vclamps-f32 %v106_v32, 1.0  ;;  %v138_v32 = vld [vmem:[#allocation2 + $0x388] sm:$0xff] }
  0x3b   :  { %843 = vst [vmem:[#allocation5 + $0x190] sm:$0xff] %v1118_v39  ;;  %v1150_v39 = vclamps-f32 %v107_v34, 1.0  ;;  %v139_v34 = vld [vmem:[#allocation2 + $0x390] sm:$0xff] }
  0x3c   :  { %844 = vst [vmem:[#allocation5 + $0x198] sm:$0xff] %v1119_v41  ;;  %v1151_v41 = vclamps-f32 %v108_v36, 1.0  ;;  %v140_v36 = vld [vmem:[#allocation2 + $0x398] sm:$0xff] }
  0x3d   :  { %845 = vst [vmem:[#allocation5 + $0x1a0] sm:$0xff] %v1120_v43  ;;  %v1152_v43 = vclamps-f32 %v109_v38, 1.0  ;;  %v141_v38 = vld [vmem:[#allocation2 + $0x3a0] sm:$0xff] }
  0x3e   :  { %846 = vst [vmem:[#allocation5 + $0x1a8] sm:$0xff] %v1121_v45  ;;  %v1153_v45 = vclamps-f32 %v110_v40, 1.0  ;;  %v142_v40 = vld [vmem:[#allocation2 + $0x3a8] sm:$0xff] }
  0x3f   :  { %847 = vst [vmem:[#allocation5 + $0x1b0] sm:$0xff] %v1122_v47  ;;  %v1154_v47 = vclamps-f32 %v111_v42, 1.0  ;;  %v143_v42 = vld [vmem:[#allocation2 + $0x3b0] sm:$0xff] }
  0x40   :  { %848 = vst [vmem:[#allocation5 + $0x1b8] sm:$0xff] %v1123_v49  ;;  %v1155_v49 = vclamps-f32 %v112_v44, 1.0  ;;  %v144_v44 = vld [vmem:[#allocation2 + $0x3b8] sm:$0xff] }
  0x41   :  { %849 = vst [vmem:[#allocation5 + $0x1c0] sm:$0xff] %v1124_v51  ;;  %v1156_v51 = vclamps-f32 %v113_v46, 1.0  ;;  %v145_v46 = vld [vmem:[#allocation2 + $0x3c0] sm:$0xff] }
  0x42   :  { %850 = vst [vmem:[#allocation5 + $0x1c8] sm:$0xff] %v1125_v53  ;;  %v1157_v53 = vclamps-f32 %v114_v48, 1.0  ;;  %v146_v48 = vld [vmem:[#allocation2 + $0x3c8] sm:$0xff] }
  0x43   :  { %851 = vst [vmem:[#allocation5 + $0x1d0] sm:$0xff] %v1126_v55  ;;  %v1158_v55 = vclamps-f32 %v115_v50, 1.0  ;;  %v147_v50 = vld [vmem:[#allocation2 + $0x3d0] sm:$0xff] }
  0x44   :  { %852 = vst [vmem:[#allocation5 + $0x1d8] sm:$0xff] %v1127_v57  ;;  %v1159_v57 = vclamps-f32 %v116_v52, 1.0  ;;  %v148_v52 = vld [vmem:[#allocation2 + $0x3d8] sm:$0xff] }
  0x45   :  { %853 = vst [vmem:[#allocation5 + $0x1e0] sm:$0xff] %v1128_v59  ;;  %v1160_v59 = vclamps-f32 %v117_v54, 1.0  ;;  %v149_v54 = vld [vmem:[#allocation2 + $0x3e0] sm:$0xff] }
  0x46   :  { %854 = vst [vmem:[#allocation5 + $0x1e8] sm:$0xff] %v1129_v61  ;;  %v1161_v61 = vclamps-f32 %v118_v56, 1.0  ;;  %v150_v56 = vld [vmem:[#allocation2 + $0x3e8] sm:$0xff] }
  0x47   :  { %855 = vst [vmem:[#allocation5 + $0x1f0] sm:$0xff] %v1130_v63  ;;  %v1162_v63 = vclamps-f32 %v119_v58, 1.0  ;;  %v151_v58 = vld [vmem:[#allocation2 + $0x3f0] sm:$0xff] }
  0x48   :  { %856 = vst [vmem:[#allocation5 + $0x1f8] sm:$0xff] %v1131_v1  ;;  %v1163_v1 = vclamps-f32 %v120_v60, 1.0  ;;  %v152_v60 = vld [vmem:[#allocation2 + $0x3f8] sm:$0xff] }
  0x49   :  { %857 = vst [vmem:[#allocation5 + $0x200] sm:$0xff] %v1132_v3  ;;  %v1164_v3 = vclamps-f32 %v121_v62, 1.0  ;;  %v153_v62 = vld [vmem:[#allocation2 + $0x400] sm:$0xff] }
  0x4a   :  { %858 = vst [vmem:[#allocation5 + $0x208] sm:$0xff] %v1133_v5  ;;  %v1165_v5 = vclamps-f32 %v122_v0, 1.0  ;;  %v154_v0 = vld [vmem:[#allocation2 + $0x408] sm:$0xff] }
  0x4b   :  { %859 = vst [vmem:[#allocation5 + $0x210] sm:$0xff] %v1134_v7  ;;  %v1166_v7 = vclamps-f32 %v123_v2, 1.0  ;;  %v155_v2 = vld [vmem:[#allocation2 + $0x410] sm:$0xff] }
  0x4c   :  { %860 = vst [vmem:[#allocation5 + $0x218] sm:$0xff] %v1135_v9  ;;  %v1167_v9 = vclamps-f32 %v124_v4, 1.0  ;;  %v156_v4 = vld [vmem:[#allocation2 + $0x418] sm:$0xff] }
  0x4d   :  { %861 = vst [vmem:[#allocation5 + $0x220] sm:$0xff] %v1136_v11  ;;  %v1168_v11 = vclamps-f32 %v125_v6, 1.0  ;;  %v157_v6 = vld [vmem:[#allocation2 + $0x420] sm:$0xff] }
  0x4e   :  { %862 = vst [vmem:[#allocation5 + $0x228] sm:$0xff] %v1137_v13  ;;  %v1169_v13 = vclamps-f32 %v126_v8, 1.0  ;;  %v158_v8 = vld [vmem:[#allocation2 + $0x428] sm:$0xff] }
  0x4f   :  { %863 = vst [vmem:[#allocation5 + $0x230] sm:$0xff] %v1138_v15  ;;  %v1170_v15 = vclamps-f32 %v127_v10, 1.0  ;;  %v159_v10 = vld [vmem:[#allocation2 + $0x430] sm:$0xff] }
  0x50   :  { %864 = vst [vmem:[#allocation5 + $0x238] sm:$0xff] %v1139_v17  ;;  %v1171_v17 = vclamps-f32 %v128_v12, 1.0  ;;  %v160_v12 = vld [vmem:[#allocation2 + $0x438] sm:$0xff] }
  0x51   :  { %865 = vst [vmem:[#allocation5 + $0x240] sm:$0xff] %v1140_v19  ;;  %v1172_v19 = vclamps-f32 %v129_v14, 1.0  ;;  %v161_v14 = vld [vmem:[#allocation2 + $0x440] sm:$0xff] }
  0x52   :  { %866 = vst [vmem:[#allocation5 + $0x248] sm:$0xff] %v1141_v21  ;;  %v1173_v21 = vclamps-f32 %v130_v16, 1.0  ;;  %v162_v16 = vld [vmem:[#allocation2 + $0x448] sm:$0xff] }
  0x53   :  { %867 = vst [vmem:[#allocation5 + $0x250] sm:$0xff] %v1142_v23  ;;  %v1174_v23 = vclamps-f32 %v131_v18, 1.0  ;;  %v163_v18 = vld [vmem:[#allocation2 + $0x450] sm:$0xff] }
  0x54   :  { %868 = vst [vmem:[#allocation5 + $0x258] sm:$0xff] %v1143_v25  ;;  %v1175_v25 = vclamps-f32 %v132_v20, 1.0  ;;  %v164_v20 = vld [vmem:[#allocation2 + $0x458] sm:$0xff] }
  0x55   :  { %869 = vst [vmem:[#allocation5 + $0x260] sm:$0xff] %v1144_v27  ;;  %v1176_v27 = vclamps-f32 %v133_v22, 1.0  ;;  %v165_v22 = vld [vmem:[#allocation2 + $0x460] sm:$0xff] }
  0x56   :  { %870 = vst [vmem:[#allocation5 + $0x268] sm:$0xff] %v1145_v29  ;;  %v1177_v29 = vclamps-f32 %v134_v24, 1.0  ;;  %v166_v24 = vld [vmem:[#allocation2 + $0x468] sm:$0xff] }
  0x57   :  { %871 = vst [vmem:[#allocation5 + $0x270] sm:$0xff] %v1146_v31  ;;  %v1178_v31 = vclamps-f32 %v135_v26, 1.0  ;;  %v167_v26 = vld [vmem:[#allocation2 + $0x470] sm:$0xff] }
  0x58   :  { %872 = vst [vmem:[#allocation5 + $0x278] sm:$0xff] %v1147_v33  ;;  %v1179_v33 = vclamps-f32 %v136_v28, 1.0  ;;  %v168_v28 = vld [vmem:[#allocation2 + $0x478] sm:$0xff] }
  0x59   :  { %873 = vst [vmem:[#allocation5 + $0x280] sm:$0xff] %v1148_v35  ;;  %v1180_v35 = vclamps-f32 %v137_v30, 1.0  ;;  %v169_v30 = vld [vmem:[#allocation2 + $0x480] sm:$0xff] }
  0x5a   :  { %874 = vst [vmem:[#allocation5 + $0x288] sm:$0xff] %v1149_v37  ;;  %v1181_v37 = vclamps-f32 %v138_v32, 1.0  ;;  %v170_v32 = vld [vmem:[#allocation2 + $0x488] sm:$0xff] }
  0x5b   :  { %875 = vst [vmem:[#allocation5 + $0x290] sm:$0xff] %v1150_v39  ;;  %v1182_v39 = vclamps-f32 %v139_v34, 1.0  ;;  %v171_v34 = vld [vmem:[#allocation2 + $0x490] sm:$0xff] }
  0x5c   :  { %876 = vst [vmem:[#allocation5 + $0x298] sm:$0xff] %v1151_v41  ;;  %v1183_v41 = vclamps-f32 %v140_v36, 1.0  ;;  %v172_v36 = vld [vmem:[#allocation2 + $0x498] sm:$0xff] }
  0x5d   :  { %877 = vst [vmem:[#allocation5 + $0x2a0] sm:$0xff] %v1152_v43  ;;  %v1184_v43 = vclamps-f32 %v141_v38, 1.0  ;;  %v173_v38 = vld [vmem:[#allocation2 + $0x4a0] sm:$0xff] }
  0x5e   :  { %878 = vst [vmem:[#allocation5 + $0x2a8] sm:$0xff] %v1153_v45  ;;  %v1185_v45 = vclamps-f32 %v142_v40, 1.0  ;;  %v174_v40 = vld [vmem:[#allocation2 + $0x4a8] sm:$0xff] }
  0x5f   :  { %879 = vst [vmem:[#allocation5 + $0x2b0] sm:$0xff] %v1154_v47  ;;  %v1186_v47 = vclamps-f32 %v143_v42, 1.0  ;;  %v175_v42 = vld [vmem:[#allocation2 + $0x4b0] sm:$0xff] }
  0x60   :  { %880 = vst [vmem:[#allocation5 + $0x2b8] sm:$0xff] %v1155_v49  ;;  %v1187_v49 = vclamps-f32 %v144_v44, 1.0  ;;  %v176_v44 = vld [vmem:[#allocation2 + $0x4b8] sm:$0xff] }
  0x61   :  { %881 = vst [vmem:[#allocation5 + $0x2c0] sm:$0xff] %v1156_v51  ;;  %v1188_v51 = vclamps-f32 %v145_v46, 1.0  ;;  %v177_v46 = vld [vmem:[#allocation2 + $0x4c0] sm:$0xff] }
  0x62   :  { %882 = vst [vmem:[#allocation5 + $0x2c8] sm:$0xff] %v1157_v53  ;;  %v1189_v53 = vclamps-f32 %v146_v48, 1.0  ;;  %v178_v48 = vld [vmem:[#allocation2 + $0x4c8] sm:$0xff] }
  0x63   :  { %883 = vst [vmem:[#allocation5 + $0x2d0] sm:$0xff] %v1158_v55  ;;  %v1190_v55 = vclamps-f32 %v147_v50, 1.0  ;;  %v179_v50 = vld [vmem:[#allocation2 + $0x4d0] sm:$0xff] }
  0x64   :  { %884 = vst [vmem:[#allocation5 + $0x2d8] sm:$0xff] %v1159_v57  ;;  %v1191_v57 = vclamps-f32 %v148_v52, 1.0  ;;  %v180_v52 = vld [vmem:[#allocation2 + $0x4d8] sm:$0xff] }
  0x65   :  { %885 = vst [vmem:[#allocation5 + $0x2e0] sm:$0xff] %v1160_v59  ;;  %v1192_v59 = vclamps-f32 %v149_v54, 1.0  ;;  %v181_v54 = vld [vmem:[#allocation2 + $0x4e0] sm:$0xff] }
  0x66   :  { %886 = vst [vmem:[#allocation5 + $0x2e8] sm:$0xff] %v1161_v61  ;;  %v1193_v61 = vclamps-f32 %v150_v56, 1.0  ;;  %v182_v56 = vld [vmem:[#allocation2 + $0x4e8] sm:$0xff] }
  0x67   :  { %887 = vst [vmem:[#allocation5 + $0x2f0] sm:$0xff] %v1162_v63  ;;  %v1194_v63 = vclamps-f32 %v151_v58, 1.0  ;;  %v183_v58 = vld [vmem:[#allocation2 + $0x4f0] sm:$0xff] }
  0x68   :  { %888 = vst [vmem:[#allocation5 + $0x2f8] sm:$0xff] %v1163_v1  ;;  %v1195_v1 = vclamps-f32 %v152_v60, 1.0  ;;  %v184_v60 = vld [vmem:[#allocation2 + $0x4f8] sm:$0xff] }
  0x69   :  { %889 = vst [vmem:[#allocation5 + $0x300] sm:$0xff] %v1164_v3  ;;  %v1196_v3 = vclamps-f32 %v153_v62, 1.0  ;;  %v185_v62 = vld [vmem:[#allocation2 + $0x500] sm:$0xff] }
  0x6a   :  { %890 = vst [vmem:[#allocation5 + $0x308] sm:$0xff] %v1165_v5  ;;  %v1197_v5 = vclamps-f32 %v154_v0, 1.0  ;;  %v186_v0 = vld [vmem:[#allocation2 + $0x508] sm:$0xff] }
  0x6b   :  { %891 = vst [vmem:[#allocation5 + $0x310] sm:$0xff] %v1166_v7  ;;  %v1198_v7 = vclamps-f32 %v155_v2, 1.0  ;;  %v187_v2 = vld [vmem:[#allocation2 + $0x510] sm:$0xff] }
  0x6c   :  { %892 = vst [vmem:[#allocation5 + $0x318] sm:$0xff] %v1167_v9  ;;  %v1199_v9 = vclamps-f32 %v156_v4, 1.0  ;;  %v188_v4 = vld [vmem:[#allocation2 + $0x518] sm:$0xff] }
  0x6d   :  { %893 = vst [vmem:[#allocation5 + $0x320] sm:$0xff] %v1168_v11  ;;  %v1200_v11 = vclamps-f32 %v157_v6, 1.0  ;;  %v189_v6 = vld [vmem:[#allocation2 + $0x520] sm:$0xff] }
  0x6e   :  { %894 = vst [vmem:[#allocation5 + $0x328] sm:$0xff] %v1169_v13  ;;  %v1201_v13 = vclamps-f32 %v158_v8, 1.0  ;;  %v190_v8 = vld [vmem:[#allocation2 + $0x528] sm:$0xff] }
  0x6f   :  { %895 = vst [vmem:[#allocation5 + $0x330] sm:$0xff] %v1170_v15  ;;  %v1202_v15 = vclamps-f32 %v159_v10, 1.0  ;;  %v191_v10 = vld [vmem:[#allocation2 + $0x530] sm:$0xff] }
  0x70   :  { %896 = vst [vmem:[#allocation5 + $0x338] sm:$0xff] %v1171_v17  ;;  %v1203_v17 = vclamps-f32 %v160_v12, 1.0  ;;  %v192_v12 = vld [vmem:[#allocation2 + $0x538] sm:$0xff] }
  0x71   :  { %897 = vst [vmem:[#allocation5 + $0x340] sm:$0xff] %v1172_v19  ;;  %v1204_v19 = vclamps-f32 %v161_v14, 1.0  ;;  %v193_v14 = vld [vmem:[#allocation2 + $0x540] sm:$0xff] }
  0x72   :  { %898 = vst [vmem:[#allocation5 + $0x348] sm:$0xff] %v1173_v21  ;;  %v1205_v21 = vclamps-f32 %v162_v16, 1.0  ;;  %v194_v16 = vld [vmem:[#allocation2 + $0x548] sm:$0xff] }
  0x73   :  { %899 = vst [vmem:[#allocation5 + $0x350] sm:$0xff] %v1174_v23  ;;  %v1206_v23 = vclamps-f32 %v163_v18, 1.0  ;;  %v195_v18 = vld [vmem:[#allocation2 + $0x550] sm:$0xff] }
  0x74   :  { %900 = vst [vmem:[#allocation5 + $0x358] sm:$0xff] %v1175_v25  ;;  %v1207_v25 = vclamps-f32 %v164_v20, 1.0  ;;  %v196_v20 = vld [vmem:[#allocation2 + $0x558] sm:$0xff] }
  0x75   :  { %901 = vst [vmem:[#allocation5 + $0x360] sm:$0xff] %v1176_v27  ;;  %v1208_v27 = vclamps-f32 %v165_v22, 1.0  ;;  %v197_v22 = vld [vmem:[#allocation2 + $0x560] sm:$0xff] }
  0x76   :  { %902 = vst [vmem:[#allocation5 + $0x368] sm:$0xff] %v1177_v29  ;;  %v1209_v29 = vclamps-f32 %v166_v24, 1.0  ;;  %v198_v24 = vld [vmem:[#allocation2 + $0x568] sm:$0xff] }
  0x77   :  { %903 = vst [vmem:[#allocation5 + $0x370] sm:$0xff] %v1178_v31  ;;  %v1210_v31 = vclamps-f32 %v167_v26, 1.0  ;;  %v199_v26 = vld [vmem:[#allocation2 + $0x570] sm:$0xff] }
  0x78   :  { %904 = vst [vmem:[#allocation5 + $0x378] sm:$0xff] %v1179_v33  ;;  %v1211_v33 = vclamps-f32 %v168_v28, 1.0  ;;  %v200_v28 = vld [vmem:[#allocation2 + $0x578] sm:$0xff] }
  0x79   :  { %905 = vst [vmem:[#allocation5 + $0x380] sm:$0xff] %v1180_v35  ;;  %v1212_v35 = vclamps-f32 %v169_v30, 1.0  ;;  %v201_v30 = vld [vmem:[#allocation2 + $0x580] sm:$0xff] }
  0x7a   :  { %906 = vst [vmem:[#allocation5 + $0x388] sm:$0xff] %v1181_v37  ;;  %v1213_v37 = vclamps-f32 %v170_v32, 1.0  ;;  %v202_v32 = vld [vmem:[#allocation2 + $0x588] sm:$0xff] }
  0x7b   :  { %907 = vst [vmem:[#allocation5 + $0x390] sm:$0xff] %v1182_v39  ;;  %v1214_v39 = vclamps-f32 %v171_v34, 1.0  ;;  %v203_v34 = vld [vmem:[#allocation2 + $0x590] sm:$0xff] }
  0x7c   :  { %908 = vst [vmem:[#allocation5 + $0x398] sm:$0xff] %v1183_v41  ;;  %v1215_v41 = vclamps-f32 %v172_v36, 1.0  ;;  %v204_v36 = vld [vmem:[#allocation2 + $0x598] sm:$0xff] }
  0x7d   :  { %909 = vst [vmem:[#allocation5 + $0x3a0] sm:$0xff] %v1184_v43  ;;  %v1216_v43 = vclamps-f32 %v173_v38, 1.0  ;;  %v205_v38 = vld [vmem:[#allocation2 + $0x5a0] sm:$0xff] }
  0x7e   :  { %910 = vst [vmem:[#allocation5 + $0x3a8] sm:$0xff] %v1185_v45  ;;  %v1217_v45 = vclamps-f32 %v174_v40, 1.0  ;;  %v206_v40 = vld [vmem:[#allocation2 + $0x5a8] sm:$0xff] }
  0x7f   :  { %911 = vst [vmem:[#allocation5 + $0x3b0] sm:$0xff] %v1186_v47  ;;  %v1218_v47 = vclamps-f32 %v175_v42, 1.0  ;;  %v207_v42 = vld [vmem:[#allocation2 + $0x5b0] sm:$0xff] }
  0x80   :  { %912 = vst [vmem:[#allocation5 + $0x3b8] sm:$0xff] %v1187_v49  ;;  %v1219_v49 = vclamps-f32 %v176_v44, 1.0  ;;  %v208_v44 = vld [vmem:[#allocation2 + $0x5b8] sm:$0xff] }
  0x81   :  { %913 = vst [vmem:[#allocation5 + $0x3c0] sm:$0xff] %v1188_v51  ;;  %v1220_v51 = vclamps-f32 %v177_v46, 1.0  ;;  %v209_v46 = vld [vmem:[#allocation2 + $0x5c0] sm:$0xff] }
  0x82   :  { %914 = vst [vmem:[#allocation5 + $0x3c8] sm:$0xff] %v1189_v53  ;;  %v1221_v53 = vclamps-f32 %v178_v48, 1.0  ;;  %v210_v48 = vld [vmem:[#allocation2 + $0x5c8] sm:$0xff] }
  0x83   :  { %915 = vst [vmem:[#allocation5 + $0x3d0] sm:$0xff] %v1190_v55  ;;  %v1222_v55 = vclamps-f32 %v179_v50, 1.0  ;;  %v211_v50 = vld [vmem:[#allocation2 + $0x5d0] sm:$0xff] }
  0x84   :  { %916 = vst [vmem:[#allocation5 + $0x3d8] sm:$0xff] %v1191_v57  ;;  %v1223_v57 = vclamps-f32 %v180_v52, 1.0  ;;  %v212_v52 = vld [vmem:[#allocation2 + $0x5d8] sm:$0xff] }
  0x85   :  { %917 = vst [vmem:[#allocation5 + $0x3e0] sm:$0xff] %v1192_v59  ;;  %v1224_v59 = vclamps-f32 %v181_v54, 1.0  ;;  %v213_v54 = vld [vmem:[#allocation2 + $0x5e0] sm:$0xff] }
  0x86   :  { %918 = vst [vmem:[#allocation5 + $0x3e8] sm:$0xff] %v1193_v61  ;;  %v1225_v61 = vclamps-f32 %v182_v56, 1.0  ;;  %v214_v56 = vld [vmem:[#allocation2 + $0x5e8] sm:$0xff] }
  0x87   :  { %919 = vst [vmem:[#allocation5 + $0x3f0] sm:$0xff] %v1194_v63  ;;  %v1226_v63 = vclamps-f32 %v183_v58, 1.0  ;;  %v215_v58 = vld [vmem:[#allocation2 + $0x5f0] sm:$0xff] }
  0x88   :  { %920 = vst [vmem:[#allocation5 + $0x3f8] sm:$0xff] %v1195_v1  ;;  %v1227_v1 = vclamps-f32 %v184_v60, 1.0  ;;  %v216_v60 = vld [vmem:[#allocation2 + $0x5f8] sm:$0xff] }
  0x89   :  { %921 = vst [vmem:[#allocation5 + $0x400] sm:$0xff] %v1196_v3  ;;  %v1228_v3 = vclamps-f32 %v185_v62, 1.0  ;;  %v217_v62 = vld [vmem:[#allocation2 + $0x600] sm:$0xff] }
  0x8a   :  { %922 = vst [vmem:[#allocation5 + $0x408] sm:$0xff] %v1197_v5  ;;  %v1229_v5 = vclamps-f32 %v186_v0, 1.0  ;;  %v218_v0 = vld [vmem:[#allocation2 + $0x608] sm:$0xff] }
  0x8b   :  { %923 = vst [vmem:[#allocation5 + $0x410] sm:$0xff] %v1198_v7  ;;  %v1230_v7 = vclamps-f32 %v187_v2, 1.0  ;;  %v219_v2 = vld [vmem:[#allocation2 + $0x610] sm:$0xff] }
  0x8c   :  { %924 = vst [vmem:[#allocation5 + $0x418] sm:$0xff] %v1199_v9  ;;  %v1231_v9 = vclamps-f32 %v188_v4, 1.0  ;;  %v220_v4 = vld [vmem:[#allocation2 + $0x618] sm:$0xff] }
  0x8d   :  { %925 = vst [vmem:[#allocation5 + $0x420] sm:$0xff] %v1200_v11  ;;  %v1232_v11 = vclamps-f32 %v189_v6, 1.0  ;;  %v221_v6 = vld [vmem:[#allocation2 + $0x620] sm:$0xff] }
  0x8e   :  { %926 = vst [vmem:[#allocation5 + $0x428] sm:$0xff] %v1201_v13  ;;  %v1233_v13 = vclamps-f32 %v190_v8, 1.0  ;;  %v222_v8 = vld [vmem:[#allocation2 + $0x628] sm:$0xff] }
  0x8f   :  { %927 = vst [vmem:[#allocation5 + $0x430] sm:$0xff] %v1202_v15  ;;  %v1234_v15 = vclamps-f32 %v191_v10, 1.0  ;;  %v223_v10 = vld [vmem:[#allocation2 + $0x630] sm:$0xff] }
  0x90   :  { %928 = vst [vmem:[#allocation5 + $0x438] sm:$0xff] %v1203_v17  ;;  %v1235_v17 = vclamps-f32 %v192_v12, 1.0  ;;  %v224_v12 = vld [vmem:[#allocation2 + $0x638] sm:$0xff] }
  0x91   :  { %929 = vst [vmem:[#allocation5 + $0x440] sm:$0xff] %v1204_v19  ;;  %v1236_v19 = vclamps-f32 %v193_v14, 1.0  ;;  %v225_v14 = vld [vmem:[#allocation2 + $0x640] sm:$0xff] }
  0x92   :  { %930 = vst [vmem:[#allocation5 + $0x448] sm:$0xff] %v1205_v21  ;;  %v1237_v21 = vclamps-f32 %v194_v16, 1.0  ;;  %v226_v16 = vld [vmem:[#allocation2 + $0x648] sm:$0xff] }
  0x93   :  { %931 = vst [vmem:[#allocation5 + $0x450] sm:$0xff] %v1206_v23  ;;  %v1238_v23 = vclamps-f32 %v195_v18, 1.0  ;;  %v227_v18 = vld [vmem:[#allocation2 + $0x650] sm:$0xff] }
  0x94   :  { %932 = vst [vmem:[#allocation5 + $0x458] sm:$0xff] %v1207_v25  ;;  %v1239_v25 = vclamps-f32 %v196_v20, 1.0  ;;  %v228_v20 = vld [vmem:[#allocation2 + $0x658] sm:$0xff] }
  0x95   :  { %933 = vst [vmem:[#allocation5 + $0x460] sm:$0xff] %v1208_v27  ;;  %v1240_v27 = vclamps-f32 %v197_v22, 1.0  ;;  %v229_v22 = vld [vmem:[#allocation2 + $0x660] sm:$0xff] }
  0x96   :  { %934 = vst [vmem:[#allocation5 + $0x468] sm:$0xff] %v1209_v29  ;;  %v1241_v29 = vclamps-f32 %v198_v24, 1.0  ;;  %v230_v24 = vld [vmem:[#allocation2 + $0x668] sm:$0xff] }
  0x97   :  { %935 = vst [vmem:[#allocation5 + $0x470] sm:$0xff] %v1210_v31  ;;  %v1242_v31 = vclamps-f32 %v199_v26, 1.0  ;;  %v231_v26 = vld [vmem:[#allocation2 + $0x670] sm:$0xff] }
  0x98   :  { %936 = vst [vmem:[#allocation5 + $0x478] sm:$0xff] %v1211_v33  ;;  %v1243_v33 = vclamps-f32 %v200_v28, 1.0  ;;  %v232_v28 = vld [vmem:[#allocation2 + $0x678] sm:$0xff] }
  0x99   :  { %937 = vst [vmem:[#allocation5 + $0x480] sm:$0xff] %v1212_v35  ;;  %v1244_v35 = vclamps-f32 %v201_v30, 1.0  ;;  %v233_v30 = vld [vmem:[#allocation2 + $0x680] sm:$0xff] }
  0x9a   :  { %938 = vst [vmem:[#allocation5 + $0x488] sm:$0xff] %v1213_v37  ;;  %v1245_v37 = vclamps-f32 %v202_v32, 1.0  ;;  %v234_v32 = vld [vmem:[#allocation2 + $0x688] sm:$0xff] }
  0x9b   :  { %939 = vst [vmem:[#allocation5 + $0x490] sm:$0xff] %v1214_v39  ;;  %v1246_v39 = vclamps-f32 %v203_v34, 1.0  ;;  %v235_v34 = vld [vmem:[#allocation2 + $0x690] sm:$0xff] }
  0x9c   :  { %940 = vst [vmem:[#allocation5 + $0x498] sm:$0xff] %v1215_v41  ;;  %v1247_v41 = vclamps-f32 %v204_v36, 1.0  ;;  %v236_v36 = vld [vmem:[#allocation2 + $0x698] sm:$0xff] }
  0x9d   :  { %941 = vst [vmem:[#allocation5 + $0x4a0] sm:$0xff] %v1216_v43  ;;  %v1248_v43 = vclamps-f32 %v205_v38, 1.0  ;;  %v237_v38 = vld [vmem:[#allocation2 + $0x6a0] sm:$0xff] }
  0x9e   :  { %942 = vst [vmem:[#allocation5 + $0x4a8] sm:$0xff] %v1217_v45  ;;  %v1249_v45 = vclamps-f32 %v206_v40, 1.0  ;;  %v238_v40 = vld [vmem:[#allocation2 + $0x6a8] sm:$0xff] }
  0x9f   :  { %943 = vst [vmem:[#allocation5 + $0x4b0] sm:$0xff] %v1218_v47  ;;  %v1250_v47 = vclamps-f32 %v207_v42, 1.0  ;;  %v239_v42 = vld [vmem:[#allocation2 + $0x6b0] sm:$0xff] }
  0xa0   :  { %944 = vst [vmem:[#allocation5 + $0x4b8] sm:$0xff] %v1219_v49  ;;  %v1251_v49 = vclamps-f32 %v208_v44, 1.0  ;;  %v240_v44 = vld [vmem:[#allocation2 + $0x6b8] sm:$0xff] }
  0xa1   :  { %945 = vst [vmem:[#allocation5 + $0x4c0] sm:$0xff] %v1220_v51  ;;  %v1252_v51 = vclamps-f32 %v209_v46, 1.0  ;;  %v241_v46 = vld [vmem:[#allocation2 + $0x6c0] sm:$0xff] }
  0xa2   :  { %946 = vst [vmem:[#allocation5 + $0x4c8] sm:$0xff] %v1221_v53  ;;  %v1253_v53 = vclamps-f32 %v210_v48, 1.0  ;;  %v242_v48 = vld [vmem:[#allocation2 + $0x6c8] sm:$0xff] }
  0xa3   :  { %947 = vst [vmem:[#allocation5 + $0x4d0] sm:$0xff] %v1222_v55  ;;  %v1254_v55 = vclamps-f32 %v211_v50, 1.0  ;;  %v243_v50 = vld [vmem:[#allocation2 + $0x6d0] sm:$0xff] }
  0xa4   :  { %948 = vst [vmem:[#allocation5 + $0x4d8] sm:$0xff] %v1223_v57  ;;  %v1255_v57 = vclamps-f32 %v212_v52, 1.0  ;;  %v244_v52 = vld [vmem:[#allocation2 + $0x6d8] sm:$0xff] }
  0xa5   :  { %949 = vst [vmem:[#allocation5 + $0x4e0] sm:$0xff] %v1224_v59  ;;  %v1256_v59 = vclamps-f32 %v213_v54, 1.0  ;;  %v245_v54 = vld [vmem:[#allocation2 + $0x6e0] sm:$0xff] }
  0xa6   :  { %950 = vst [vmem:[#allocation5 + $0x4e8] sm:$0xff] %v1225_v61  ;;  %v1257_v61 = vclamps-f32 %v214_v56, 1.0  ;;  %v246_v56 = vld [vmem:[#allocation2 + $0x6e8] sm:$0xff] }
  0xa7   :  { %951 = vst [vmem:[#allocation5 + $0x4f0] sm:$0xff] %v1226_v63  ;;  %v1258_v63 = vclamps-f32 %v215_v58, 1.0  ;;  %v247_v58 = vld [vmem:[#allocation2 + $0x6f0] sm:$0xff] }
  0xa8   :  { %952 = vst [vmem:[#allocation5 + $0x4f8] sm:$0xff] %v1227_v1  ;;  %v1259_v1 = vclamps-f32 %v216_v60, 1.0  ;;  %v248_v60 = vld [vmem:[#allocation2 + $0x6f8] sm:$0xff] }
  0xa9   :  { %953 = vst [vmem:[#allocation5 + $0x500] sm:$0xff] %v1228_v3  ;;  %v1260_v3 = vclamps-f32 %v217_v62, 1.0  ;;  %v249_v62 = vld [vmem:[#allocation2 + $0x700] sm:$0xff] }
  0xaa   :  { %954 = vst [vmem:[#allocation5 + $0x508] sm:$0xff] %v1229_v5  ;;  %v1261_v5 = vclamps-f32 %v218_v0, 1.0  ;;  %v250_v0 = vld [vmem:[#allocation2 + $0x708] sm:$0xff] }
  0xab   :  { %955 = vst [vmem:[#allocation5 + $0x510] sm:$0xff] %v1230_v7  ;;  %v1262_v7 = vclamps-f32 %v219_v2, 1.0  ;;  %v251_v2 = vld [vmem:[#allocation2 + $0x710] sm:$0xff] }
  0xac   :  { %956 = vst [vmem:[#allocation5 + $0x518] sm:$0xff] %v1231_v9  ;;  %v1263_v9 = vclamps-f32 %v220_v4, 1.0  ;;  %v252_v4 = vld [vmem:[#allocation2 + $0x718] sm:$0xff] }
  0xad   :  { %957 = vst [vmem:[#allocation5 + $0x520] sm:$0xff] %v1232_v11  ;;  %v1264_v11 = vclamps-f32 %v221_v6, 1.0  ;;  %v253_v6 = vld [vmem:[#allocation2 + $0x720] sm:$0xff] }
  0xae   :  { %958 = vst [vmem:[#allocation5 + $0x528] sm:$0xff] %v1233_v13  ;;  %v1265_v13 = vclamps-f32 %v222_v8, 1.0  ;;  %v254_v8 = vld [vmem:[#allocation2 + $0x728] sm:$0xff] }
  0xaf   :  { %959 = vst [vmem:[#allocation5 + $0x530] sm:$0xff] %v1234_v15  ;;  %v1266_v15 = vclamps-f32 %v223_v10, 1.0  ;;  %v255_v10 = vld [vmem:[#allocation2 + $0x730] sm:$0xff] }
  0xb0   :  { %960 = vst [vmem:[#allocation5 + $0x538] sm:$0xff] %v1235_v17  ;;  %v1267_v17 = vclamps-f32 %v224_v12, 1.0  ;;  %v256_v12 = vld [vmem:[#allocation2 + $0x738] sm:$0xff] }
  0xb1   :  { %961 = vst [vmem:[#allocation5 + $0x540] sm:$0xff] %v1236_v19  ;;  %v1268_v19 = vclamps-f32 %v225_v14, 1.0  ;;  %v257_v14 = vld [vmem:[#allocation2 + $0x740] sm:$0xff] }
  0xb2   :  { %962 = vst [vmem:[#allocation5 + $0x548] sm:$0xff] %v1237_v21  ;;  %v1269_v21 = vclamps-f32 %v226_v16, 1.0  ;;  %v258_v16 = vld [vmem:[#allocation2 + $0x748] sm:$0xff] }
  0xb3   :  { %963 = vst [vmem:[#allocation5 + $0x550] sm:$0xff] %v1238_v23  ;;  %v1270_v23 = vclamps-f32 %v227_v18, 1.0  ;;  %v259_v18 = vld [vmem:[#allocation2 + $0x750] sm:$0xff] }
  0xb4   :  { %964 = vst [vmem:[#allocation5 + $0x558] sm:$0xff] %v1239_v25  ;;  %v1271_v25 = vclamps-f32 %v228_v20, 1.0  ;;  %v260_v20 = vld [vmem:[#allocation2 + $0x758] sm:$0xff] }
  0xb5   :  { %965 = vst [vmem:[#allocation5 + $0x560] sm:$0xff] %v1240_v27  ;;  %v1272_v27 = vclamps-f32 %v229_v22, 1.0  ;;  %v261_v22 = vld [vmem:[#allocation2 + $0x760] sm:$0xff] }
  0xb6   :  { %966 = vst [vmem:[#allocation5 + $0x568] sm:$0xff] %v1241_v29  ;;  %v1273_v29 = vclamps-f32 %v230_v24, 1.0  ;;  %v262_v24 = vld [vmem:[#allocation2 + $0x768] sm:$0xff] }
  0xb7   :  { %967 = vst [vmem:[#allocation5 + $0x570] sm:$0xff] %v1242_v31  ;;  %v1274_v31 = vclamps-f32 %v231_v26, 1.0  ;;  %v263_v26 = vld [vmem:[#allocation2 + $0x770] sm:$0xff] }
  0xb8   :  { %968 = vst [vmem:[#allocation5 + $0x578] sm:$0xff] %v1243_v33  ;;  %v1275_v33 = vclamps-f32 %v232_v28, 1.0  ;;  %v264_v28 = vld [vmem:[#allocation2 + $0x778] sm:$0xff] }
  0xb9   :  { %969 = vst [vmem:[#allocation5 + $0x580] sm:$0xff] %v1244_v35  ;;  %v1276_v35 = vclamps-f32 %v233_v30, 1.0  ;;  %v265_v30 = vld [vmem:[#allocation2 + $0x780] sm:$0xff] }
  0xba   :  { %970 = vst [vmem:[#allocation5 + $0x588] sm:$0xff] %v1245_v37  ;;  %v1277_v37 = vclamps-f32 %v234_v32, 1.0  ;;  %v266_v32 = vld [vmem:[#allocation2 + $0x788] sm:$0xff] }
  0xbb   :  { %971 = vst [vmem:[#allocation5 + $0x590] sm:$0xff] %v1246_v39  ;;  %v1278_v39 = vclamps-f32 %v235_v34, 1.0  ;;  %v267_v34 = vld [vmem:[#allocation2 + $0x790] sm:$0xff] }
  0xbc   :  { %972 = vst [vmem:[#allocation5 + $0x598] sm:$0xff] %v1247_v41  ;;  %v1279_v41 = vclamps-f32 %v236_v36, 1.0  ;;  %v268_v36 = vld [vmem:[#allocation2 + $0x798] sm:$0xff] }
  0xbd   :  { %973 = vst [vmem:[#allocation5 + $0x5a0] sm:$0xff] %v1248_v43  ;;  %v1280_v43 = vclamps-f32 %v237_v38, 1.0  ;;  %v269_v38 = vld [vmem:[#allocation2 + $0x7a0] sm:$0xff] }
  0xbe   :  { %974 = vst [vmem:[#allocation5 + $0x5a8] sm:$0xff] %v1249_v45  ;;  %v1281_v45 = vclamps-f32 %v238_v40, 1.0  ;;  %v270_v40 = vld [vmem:[#allocation2 + $0x7a8] sm:$0xff] }
  0xbf   :  { %975 = vst [vmem:[#allocation5 + $0x5b0] sm:$0xff] %v1250_v47  ;;  %v1282_v47 = vclamps-f32 %v239_v42, 1.0  ;;  %v271_v42 = vld [vmem:[#allocation2 + $0x7b0] sm:$0xff] }
  0xc0   :  { %976 = vst [vmem:[#allocation5 + $0x5b8] sm:$0xff] %v1251_v49  ;;  %v1283_v49 = vclamps-f32 %v240_v44, 1.0  ;;  %v272_v44 = vld [vmem:[#allocation2 + $0x7b8] sm:$0xff] }
  0xc1   :  { %977 = vst [vmem:[#allocation5 + $0x5c0] sm:$0xff] %v1252_v51  ;;  %v1284_v51 = vclamps-f32 %v241_v46, 1.0  ;;  %v273_v46 = vld [vmem:[#allocation2 + $0x7c0] sm:$0xff] }
  0xc2   :  { %978 = vst [vmem:[#allocation5 + $0x5c8] sm:$0xff] %v1253_v53  ;;  %v1285_v53 = vclamps-f32 %v242_v48, 1.0  ;;  %v274_v48 = vld [vmem:[#allocation2 + $0x7c8] sm:$0xff] }
  0xc3   :  { %979 = vst [vmem:[#allocation5 + $0x5d0] sm:$0xff] %v1254_v55  ;;  %v1286_v55 = vclamps-f32 %v243_v50, 1.0  ;;  %v275_v50 = vld [vmem:[#allocation2 + $0x7d0] sm:$0xff] }
  0xc4   :  { %980 = vst [vmem:[#allocation5 + $0x5d8] sm:$0xff] %v1255_v57  ;;  %v1287_v57 = vclamps-f32 %v244_v52, 1.0  ;;  %v276_v52 = vld [vmem:[#allocation2 + $0x7d8] sm:$0xff] }
  0xc5   :  { %981 = vst [vmem:[#allocation5 + $0x5e0] sm:$0xff] %v1256_v59  ;;  %v1288_v59 = vclamps-f32 %v245_v54, 1.0  ;;  %v277_v54 = vld [vmem:[#allocation2 + $0x7e0] sm:$0xff] }
  0xc6   :  { %982 = vst [vmem:[#allocation5 + $0x5e8] sm:$0xff] %v1257_v61  ;;  %v1289_v61 = vclamps-f32 %v246_v56, 1.0  ;;  %v278_v56 = vld [vmem:[#allocation2 + $0x7e8] sm:$0xff] }
  0xc7   :  { %983 = vst [vmem:[#allocation5 + $0x5f0] sm:$0xff] %v1258_v63  ;;  %v1290_v63 = vclamps-f32 %v247_v58, 1.0  ;;  %v279_v58 = vld [vmem:[#allocation2 + $0x7f0] sm:$0xff] }
  0xc8   :  { %984 = vst [vmem:[#allocation5 + $0x5f8] sm:$0xff] %v1259_v1  ;;  %v1291_v1 = vclamps-f32 %v248_v60, 1.0  ;;  %v280_v60 = vld [vmem:[#allocation2 + $0x7f8] sm:$0xff] }
  0xc9   :  { %985 = vst [vmem:[#allocation5 + $0x600] sm:$0xff] %v1260_v3  ;;  %v1292_v3 = vclamps-f32 %v249_v62, 1.0  ;;  %v1322_v62 = vclamps-f32 %v279_v58, 1.0 }
  0xca   :  { %986 = vst [vmem:[#allocation5 + $0x608] sm:$0xff] %v1261_v5  ;;  %v1293_v5 = vclamps-f32 %v250_v0, 1.0 }
  0xcb   :  { %987 = vst [vmem:[#allocation5 + $0x610] sm:$0xff] %v1262_v7  ;;  %v1294_v7 = vclamps-f32 %v251_v2, 1.0 }
  0xcc   :  { %988 = vst [vmem:[#allocation5 + $0x618] sm:$0xff] %v1263_v9  ;;  %v1295_v9 = vclamps-f32 %v252_v4, 1.0 }
  0xcd   :  { %989 = vst [vmem:[#allocation5 + $0x620] sm:$0xff] %v1264_v11  ;;  %v1296_v11 = vclamps-f32 %v253_v6, 1.0 }
  0xce   :  { %990 = vst [vmem:[#allocation5 + $0x628] sm:$0xff] %v1265_v13  ;;  %v1297_v13 = vclamps-f32 %v254_v8, 1.0 }
  0xcf   :  { %991 = vst [vmem:[#allocation5 + $0x630] sm:$0xff] %v1266_v15  ;;  %v1298_v15 = vclamps-f32 %v255_v10, 1.0 }
  0xd0   :  { %992 = vst [vmem:[#allocation5 + $0x638] sm:$0xff] %v1267_v17  ;;  %v1299_v17 = vclamps-f32 %v256_v12, 1.0 }
  0xd1   :  { %993 = vst [vmem:[#allocation5 + $0x640] sm:$0xff] %v1268_v19  ;;  %v1300_v19 = vclamps-f32 %v257_v14, 1.0 }
  0xd2   :  { %994 = vst [vmem:[#allocation5 + $0x648] sm:$0xff] %v1269_v21  ;;  %v1301_v21 = vclamps-f32 %v258_v16, 1.0 }
  0xd3   :  { %995 = vst [vmem:[#allocation5 + $0x650] sm:$0xff] %v1270_v23  ;;  %v1302_v23 = vclamps-f32 %v259_v18, 1.0 }
  0xd4   :  { %996 = vst [vmem:[#allocation5 + $0x658] sm:$0xff] %v1271_v25  ;;  %v1303_v25 = vclamps-f32 %v260_v20, 1.0 }
  0xd5   :  { %997 = vst [vmem:[#allocation5 + $0x660] sm:$0xff] %v1272_v27  ;;  %v1304_v27 = vclamps-f32 %v261_v22, 1.0 }
  0xd6   :  { %998 = vst [vmem:[#allocation5 + $0x668] sm:$0xff] %v1273_v29  ;;  %v1305_v29 = vclamps-f32 %v262_v24, 1.0 }
  0xd7   :  { %999 = vst [vmem:[#allocation5 + $0x670] sm:$0xff] %v1274_v31  ;;  %v1306_v31 = vclamps-f32 %v263_v26, 1.0 }
  0xd8   :  { %1000 = vst [vmem:[#allocation5 + $0x678] sm:$0xff] %v1275_v33  ;;  %v1307_v33 = vclamps-f32 %v264_v28, 1.0 }
  0xd9   :  { %1001 = vst [vmem:[#allocation5 + $0x680] sm:$0xff] %v1276_v35  ;;  %v1308_v35 = vclamps-f32 %v265_v30, 1.0 }
  0xda   :  { %1002 = vst [vmem:[#allocation5 + $0x688] sm:$0xff] %v1277_v37  ;;  %v1309_v37 = vclamps-f32 %v266_v32, 1.0 }
  0xdb   :  { %1003 = vst [vmem:[#allocation5 + $0x690] sm:$0xff] %v1278_v39  ;;  %v1310_v39 = vclamps-f32 %v267_v34, 1.0 }
  0xdc   :  { %1004 = vst [vmem:[#allocation5 + $0x698] sm:$0xff] %v1279_v41  ;;  %v1311_v41 = vclamps-f32 %v268_v36, 1.0 }
  0xdd   :  { %1005 = vst [vmem:[#allocation5 + $0x6a0] sm:$0xff] %v1280_v43  ;;  %v1312_v43 = vclamps-f32 %v269_v38, 1.0 }
  0xde   :  { %1006 = vst [vmem:[#allocation5 + $0x6a8] sm:$0xff] %v1281_v45  ;;  %v1313_v45 = vclamps-f32 %v270_v40, 1.0 }
  0xdf   :  { %1007 = vst [vmem:[#allocation5 + $0x6b0] sm:$0xff] %v1282_v47  ;;  %v1314_v47 = vclamps-f32 %v271_v42, 1.0 }
  0xe0   :  { %1008 = vst [vmem:[#allocation5 + $0x6b8] sm:$0xff] %v1283_v49  ;;  %v1315_v49 = vclamps-f32 %v272_v44, 1.0 }
  0xe1   :  { %1009 = vst [vmem:[#allocation5 + $0x6c0] sm:$0xff] %v1284_v51  ;;  %v1316_v51 = vclamps-f32 %v273_v46, 1.0 }
  0xe2   :  { %1010 = vst [vmem:[#allocation5 + $0x6c8] sm:$0xff] %v1285_v53  ;;  %v1317_v53 = vclamps-f32 %v274_v48, 1.0 }
  0xe3   :  { %1011 = vst [vmem:[#allocation5 + $0x6d0] sm:$0xff] %v1286_v55  ;;  %v1318_v55 = vclamps-f32 %v275_v50, 1.0 }
  0xe4   :  { %1012 = vst [vmem:[#allocation5 + $0x6d8] sm:$0xff] %v1287_v57  ;;  %v1319_v57 = vclamps-f32 %v276_v52, 1.0 }
  0xe5   :  { %1013 = vst [vmem:[#allocation5 + $0x6e0] sm:$0xff] %v1288_v59  ;;  %v1320_v59 = vclamps-f32 %v277_v54, 1.0 }
  0xe6   :  { %1014 = vst [vmem:[#allocation5 + $0x6e8] sm:$0xff] %v1289_v61  ;;  %v1321_v61 = vclamps-f32 %v278_v56, 1.0 }
  0xe7   :  { %1015 = vst [vmem:[#allocation5 + $0x6f0] sm:$0xff] %v1290_v63  ;;  %v1323_v63 = vclamps-f32 %v280_v60, 1.0 }
  0xe8   :  { %1016 = vst [vmem:[#allocation5 + $0x6f8] sm:$0xff] %v1291_v1 }
  0xe9   :  { %1017 = vst [vmem:[#allocation5 + $0x700] sm:$0xff] %v1292_v3 }
  0xea   :  { %1018 = vst [vmem:[#allocation5 + $0x708] sm:$0xff] %v1293_v5 }
  0xeb   :  { %1019 = vst [vmem:[#allocation5 + $0x710] sm:$0xff] %v1294_v7 }
  0xec   :  { %1020 = vst [vmem:[#allocation5 + $0x718] sm:$0xff] %v1295_v9 }
  0xed   :  { %1021 = vst [vmem:[#allocation5 + $0x720] sm:$0xff] %v1296_v11 }
  0xee   :  { %1022 = vst [vmem:[#allocation5 + $0x728] sm:$0xff] %v1297_v13 }
  0xef   :  { %1023 = vst [vmem:[#allocation5 + $0x730] sm:$0xff] %v1298_v15 }
  0xf0   :  { %1024 = vst [vmem:[#allocation5 + $0x738] sm:$0xff] %v1299_v17 }
  0xf1   :  { %1025 = vst [vmem:[#allocation5 + $0x740] sm:$0xff] %v1300_v19 }
  0xf2   :  { %1026 = vst [vmem:[#allocation5 + $0x748] sm:$0xff] %v1301_v21 }
  0xf3   :  { %1027 = vst [vmem:[#allocation5 + $0x750] sm:$0xff] %v1302_v23 }
  0xf4   :  { %1028 = vst [vmem:[#allocation5 + $0x758] sm:$0xff] %v1303_v25 }
  0xf5   :  { %1029 = vst [vmem:[#allocation5 + $0x760] sm:$0xff] %v1304_v27 }
  0xf6   :  { %1030 = vst [vmem:[#allocation5 + $0x768] sm:$0xff] %v1305_v29 }
  0xf7   :  { %1031 = vst [vmem:[#allocation5 + $0x770] sm:$0xff] %v1306_v31 }
  0xf8   :  { %1032 = vst [vmem:[#allocation5 + $0x778] sm:$0xff] %v1307_v33 }
  0xf9   :  { %1033 = vst [vmem:[#allocation5 + $0x780] sm:$0xff] %v1308_v35 }
  0xfa   :  { %1034 = vst [vmem:[#allocation5 + $0x788] sm:$0xff] %v1309_v37 }
  0xfb   :  { %1035 = vst [vmem:[#allocation5 + $0x790] sm:$0xff] %v1310_v39 }
  0xfc   :  { %1036 = vst [vmem:[#allocation5 + $0x798] sm:$0xff] %v1311_v41 }
  0xfd   :  { %1037 = vst [vmem:[#allocation5 + $0x7a0] sm:$0xff] %v1312_v43 }
  0xfe   :  { %1038 = vst [vmem:[#allocation5 + $0x7a8] sm:$0xff] %v1313_v45 }
  0xff   :  { %1039 = vst [vmem:[#allocation5 + $0x7b0] sm:$0xff] %v1314_v47 }
 0x100   :  { %1040 = vst [vmem:[#allocation5 + $0x7b8] sm:$0xff] %v1315_v49 }
 0x101   :  { %1041 = vst [vmem:[#allocation5 + $0x7c0] sm:$0xff] %v1316_v51 }
 0x102   :  { %1042 = vst [vmem:[#allocation5 + $0x7c8] sm:$0xff] %v1317_v53 }
 0x103   :  { %1043 = vst [vmem:[#allocation5 + $0x7d0] sm:$0xff] %v1318_v55 }
 0x104   :  { %1044 = vst [vmem:[#allocation5 + $0x7d8] sm:$0xff] %v1319_v57 }
 0x105   :  { %1045 = vst [vmem:[#allocation5 + $0x7e0] sm:$0xff] %v1320_v59 }
 0x106   :  { %1046 = vst [vmem:[#allocation5 + $0x7e8] sm:$0xff] %v1321_v61 }
 0x107   :  { %1047 = vst [vmem:[#allocation5 + $0x7f0] sm:$0xff] %v1322_v62 }
 0x108   :  { %1048 = vst [vmem:[#allocation5 + $0x7f8] sm:$0xff] %v1323_v63 }
 0x109   :  { %1061 = dma.vmem_to_hbm [thread:$0]  %s1054_s13, 32768, %s1056_s16, [#allocation4], %s1381_s11, %s1381_s11, %s1382_s12  }
 0x10a   :  { %1378 = dma.done.wait [#allocation4], 32768  }
 0x10b   :  { %1379 = vsyncadd [#allocation4], 4294934528 }
 0x10c   :  { %1066 = vsyncpa [#allocation3], 1 }
 0x10d   :  { %1067 = vsyncpa [#allocation4], 1 }

</bundles_post_ra>
